<compile_context>
chip_gen: v6e
topology: v6e:2x2x1
jax: 0.10.0
libtpu: 0.0.40
codegen_flags: <defaults>
</compile_context>

<pallas_src>
import functools
import math

import jax
import jax.numpy as jnp
import numpy as np
from jax import lax
from jax.experimental import pallas as pl
from jax.experimental.pallas import tpu as pltpu


def _round_up(x, m):
    return ((x + m - 1) // m) * m


# ----------------------------------------------------------------------------
# get_feature:  feats = hidden2tag(tanh(activation(src_annots)))
# ----------------------------------------------------------------------------
def feat_kernel(x_ref, w1_ref, b1_ref, w2_ref, o_ref):
    # x: [tm, SH] f32 (cast to bf16 for the MXU), w1: [SH, TH] bf16,
    # b1: [1, TH] f32, w2: [TH, T] bf16, o: [tm, T] bf16
    x = x_ref[...].astype(jnp.bfloat16)
    h = jnp.tanh(
        jnp.dot(x, w1_ref[...], preferred_element_type=jnp.float32)
        + b1_ref[...]
    )
    o_ref[...] = jnp.dot(
        h.astype(jnp.bfloat16), w2_ref[...], preferred_element_type=jnp.float32
    ).astype(o_ref.dtype)


def get_feature(src_annots, w1, b1, w2, *, tm=512):
    """Linear -> tanh -> Linear.  Returns bf16 emissions [B, L, T]."""
    B, L, SH = src_annots.shape
    TH = w1.shape[1]
    T = w2.shape[1]
    N = B * L

    # No wrapper-side padding: non-row block dims equal the full array dims
    # (always legal), the row tile is full-N or a multiple of 8, and a partial
    # boundary block (if N % tm != 0) is handled by Pallas.
    if tm >= N:
        tm = N
    else:
        tm = max(8, (tm // 8) * 8)

    x = src_annots.reshape(N, SH)                     # free reshape, stays f32
    w1b = w1.astype(jnp.bfloat16)
    w2b = w2.astype(jnp.bfloat16)
    b1f = b1.astype(jnp.float32).reshape(1, TH)

    out = pl.pallas_call(
        feat_kernel,
        out_shape=jax.ShapeDtypeStruct((N, T), jnp.bfloat16),
        grid_spec=pltpu.PrefetchScalarGridSpec(
            num_scalar_prefetch=0,
            grid=(pl.cdiv(N, tm),),
            in_specs=[
                pl.BlockSpec((tm, SH), lambda i: (i, 0)),  # row tile, pipelined
                pl.BlockSpec((SH, TH), lambda i: (0, 0)),  # weights VMEM-resident
                pl.BlockSpec((1, TH), lambda i: (0, 0)),
                pl.BlockSpec((TH, T), lambda i: (0, 0)),
            ],
            out_specs=pl.BlockSpec((tm, T), lambda i: (i, 0)),
        ),
        compiler_params=pltpu.CompilerParams(
            dimension_semantics=("parallel",),
            # 32 MiB is safe on v5e/v6e/v7x; v6e (128 MiB physical) can go higher.
            vmem_limit_bytes=32 * 1024 * 1024,
        ),
    )(x, w1b, b1f, w2b)
    return out.reshape(B, L, T)


# ----------------------------------------------------------------------------
# CRF partition function (forward algorithm) — the serial recurrence.
# Batch on the 128-lane axis; tags on sublanes.
# ----------------------------------------------------------------------------
def crf_fwd_kernel(efeats_ref, lens_ref, trans_ref, out_ref, fv_ref,
                   *, start_tag, stop_tag, use_mxu):
    # efeats_ref: [lc, T, bt] bf16 emissions (time, next_tag, batch-lane)
    # lens_ref  : [1, bt]  int32 valid length per batch (replaces mask stream)
    # trans_ref : [T, T]   f32 transitions[next_tag, prev_tag]
    # out_ref   : [1, bt]  f32 per-batch log partition function
    # fv_ref    : [T, bt]  f32 forward variable, carried across L chunks
    l = pl.program_id(1)
    lc = efeats_ref.shape[0]
    T, bt = fv_ref.shape
    trans = trans_ref[...]
    lens = lens_ref[...]

    @pl.when(l == 0)
    def _():
        row = lax.broadcasted_iota(jnp.int32, (T, bt), 0)
        fv_ref[...] = jnp.where(row == start_tag,
                                jnp.float32(0.0), jnp.float32(-10000.0))

    t0 = l * lc  # global time offset of this chunk

    if use_mxu:
        # LSE as an MXU matmul: exp(trans - rowmax) precomputed once; per
        # serial step only T*bt exps (EUP) and one small f32 matmul (MXU).
        rm = jnp.max(trans, axis=1, keepdims=True)            # [T, 1]
        expT = jnp.exp(trans - rm)                            # [T, T]

        def body(i, fv):
            feat = efeats_ref[i].astype(jnp.float32)          # [T, bt]
            m_b = jnp.max(fv, axis=0, keepdims=True)          # [1, bt]
            p = jnp.exp(fv - m_b)                             # [T, bt]
            s = jnp.dot(expT, p, preferred_element_type=jnp.float32)
            new_fv = rm + m_b + jnp.log(jnp.maximum(s, 1e-37)) + feat
            valid = (t0 + i) < lens                           # [1, bt]
            return jnp.where(valid, new_fv, fv)
    else:
        # Tiny-T VPU path; lane-broadcast of trans hoisted out of the loop.
        trans_b = jnp.broadcast_to(trans[:, :, None], (T, T, bt))

        def body(i, fv):
            feat = efeats_ref[i].astype(jnp.float32)          # [T, bt]
            ntv = fv[None, :, :] + trans_b                    # [T, T, bt]
            mx = jnp.max(ntv, axis=1)                         # [T, bt]
            lse = mx + jnp.log(jnp.sum(jnp.exp(ntv - mx[:, None, :]), axis=1))
            new_fv = lse + feat
            valid = (t0 + i) < lens
            return jnp.where(valid, new_fv, fv)

    fv = lax.fori_loop(0, lc, body, fv_ref[...], unroll=2)
    fv_ref[...] = fv

    @pl.when(l == pl.num_programs(1) - 1)
    def _():
        term = fv + trans[stop_tag][:, None]                  # [T, bt]
        mx = jnp.max(term, axis=0, keepdims=True)             # [1, bt]
        out_ref[...] = mx + jnp.log(
            jnp.sum(jnp.exp(term - mx), axis=0, keepdims=True))


def crf_loss(efeats, mask, tgt, transitions, start_tag, stop_tag, *, lc=128):
    """Extractor.forward: efeats [B,L,T], mask [B,L] (prefix mask), tgt [B,L]."""
    B, L, T = efeats.shape
    efeats_f32 = efeats.astype(jnp.float32)
    mask_f = mask.astype(jnp.float32)
    trans = transitions.astype(jnp.float32)
    lens = jnp.sum(mask_f, axis=1).astype(jnp.int32)          # prefix-mask lengths

    # ---- partition function (forward algorithm) in Pallas ----
    # bf16 [L, T, B]: time leading, tags on sublanes, batch on lanes.
    feats_ltb = jnp.transpose(efeats.astype(jnp.bfloat16), (1, 2, 0))

    if B >= 128:
        bt = 128
        Bp = _round_up(B, bt)
    else:
        bt = B                                                # full-dim block, no pad
        Bp = B
    if Bp > B:
        feats_ltb = jnp.pad(feats_ltb, ((0, 0), (0, 0), (0, Bp - B)))
        lens_row = jnp.pad(lens[None, :], ((0, 0), (0, Bp - B)))
    else:
        lens_row = lens[None, :]

    lc = max(1, min(lc, L))
    num_l = pl.cdiv(L, lc)      # partial last chunk is masked in-kernel via lens
    use_mxu = T > 16            # tiny T: VPU path; otherwise MXU LSE

    kernel = functools.partial(crf_fwd_kernel, start_tag=start_tag,
                               stop_tag=stop_tag, use_mxu=use_mxu)
    fwd = pl.pallas_call(
        kernel,
        out_shape=jax.ShapeDtypeStruct((1, Bp), jnp.float32),
        grid_spec=pltpu.PrefetchScalarGridSpec(
            num_scalar_prefetch=0,
            grid=(Bp // bt, num_l),
            in_specs=[
                pl.BlockSpec((lc, T, bt), lambda b, l: (l, 0, b)),
                pl.BlockSpec((1, bt), lambda b, l: (0, b)),
                pl.BlockSpec((T, T), lambda b, l: (0, 0)),
            ],
            out_specs=pl.BlockSpec((1, bt), lambda b, l: (0, b)),
            scratch_shapes=[pltpu.VMEM((T, bt), jnp.float32)],
        ),
        compiler_params=pltpu.CompilerParams(
            dimension_semantics=("parallel", "arbitrary"),
            vmem_limit_bytes=32 * 1024 * 1024,
        ),
    )(feats_ltb, lens_row, trans)
    forward_score = fwd[0, :B]                                # [B]

    # ---- gold sentence score: pure gather (no recurrence) -> plain XLA ----
    tgt_i = tgt.astype(jnp.int32)
    tags = jnp.concatenate(
        [jnp.full((B, 1), start_tag, jnp.int32), tgt_i], axis=1)      # [B, L+1]
    emit = jnp.take_along_axis(efeats_f32, tgt_i[:, :, None], axis=2)[..., 0]
    tr = trans[tags[:, 1:], tags[:, :-1]]                             # [B, L]
    gold = jnp.sum(mask_f * (emit + tr), axis=1)                      # [B]
    last_tag = tags[jnp.arange(B), lens]
    gold = gold + trans[stop_tag, last_tag]

    return jnp.sum(forward_score - gold) / B


# ----------------------------------------------------------------------------
# Pure-JAX reference (direct transcription of the PyTorch module)
# ----------------------------------------------------------------------------
def ref_loss(efeats, mask, tgt, trans, start_tag, stop_tag):
    B, L, T = efeats.shape
    feats = jnp.transpose(efeats, (1, 0, 2))
    msk = mask.T
    fv = jnp.full((B, T), -10000.0, jnp.float32).at[:, start_tag].set(0.0)
    for i in range(L):
        feat = feats[i]
        ntv = fv[:, None, :] + trans[None, :, :] + feat[:, :, None]
        m = jnp.max(ntv, axis=-1)
        new_fv = m + jnp.log(jnp.sum(jnp.exp(ntv - m[..., None]), axis=-1))
        fv = jnp.where(msk[i][:, None] > 0.5, new_fv, fv)
    term = fv + trans[stop_tag][None, :]
    mt = jnp.max(term, axis=-1)
    fscore = mt + jnp.log(jnp.sum(jnp.exp(term - mt[:, None]), axis=-1))

    tags = jnp.concatenate(
        [jnp.full((B, 1), start_tag, jnp.int32), tgt.astype(jnp.int32)], axis=1)
    score = jnp.zeros((B,), jnp.float32)
    rb = jnp.arange(B)
    for i in range(L):
        step = trans[tags[:, i + 1], tags[:, i]] + feats[i][rb, tags[:, i + 1]]
        score = score + jnp.where(msk[i] > 0.5, step, 0.0)
    lens = jnp.sum(mask, axis=1).astype(jnp.int32)
    score = score + trans[stop_tag, tags[rb, lens]]
    return jnp.sum(fscore - score) / B


# ----------------------------------------------------------------------------
def run_case(seed, B, L, SH, TH, T, start_tag, stop_tag, lc, loss_tol):
    key = jax.random.PRNGKey(seed)
    k0, k1, k2, k3, k4, k5, k6 = jax.random.split(key, 7)

    src_annots = jax.random.normal(k0, (B, L, SH), jnp.float32)
    # nn.Linear(shdim, thdim) weight passed transposed [SH, TH]
    w1 = jax.random.normal(k1, (SH, TH), jnp.float32) * (1.0 / math.sqrt(SH))
    b1 = jax.random.normal(k2, (1, TH), jnp.float32) * 0.1
    # nn.Linear(thdim, tgt_vocab_size, bias=False) passed transposed [TH, T]
    w2 = jax.random.normal(k3, (TH, T), jnp.float32) * (1.0 / math.sqrt(TH))
    transitions = jax.random.normal(k4, (T, T), jnp.float32)

    tgt = jax.random.randint(k5, (B, L), 2, T, dtype=jnp.int32)
    lengths = jax.random.randint(k6, (B,), 1, L + 1, dtype=jnp.int32)
    mask = (jnp.arange(L)[None, :] < lengths[:, None]).astype(jnp.float32)

    # get_feature (Linear + tanh + Linear) in Pallas -> bf16 emissions [B, L, T]
    efeats = jax.block_until_ready(get_feature(src_annots, w1, b1, w2))

    # Extractor.forward (CRF negative log-likelihood), forward-alg in Pallas
    loss = jax.block_until_ready(
        crf_loss(efeats, mask, tgt, transitions, start_tag, stop_tag, lc=lc))

    # ---- correctness checks against a pure-JAX transcription ----
    xb = src_annots.reshape(B * L, SH).astype(jnp.bfloat16)
    h_ref = jnp.tanh(
        jnp.dot(xb, w1.astype(jnp.bfloat16), preferred_element_type=jnp.float32)
        + b1)
    efeats_ref = jnp.dot(
        h_ref.astype(jnp.bfloat16), w2.astype(jnp.bfloat16),
        preferred_element_type=jnp.float32).reshape(B, L, T)
    assert np.allclose(np.asarray(efeats.astype(jnp.float32)),
                       np.asarray(efeats_ref),
                       rtol=1e-2, atol=1e-2), "efeats mismatch"

    efeats_f32 = efeats.astype(jnp.float32)
    loss_ref = ref_loss(efeats_f32, mask, tgt, transitions, start_tag, stop_tag)
    assert np.allclose(np.asarray(loss), np.asarray(loss_ref),
                       rtol=loss_tol, atol=loss_tol), (
        f"loss mismatch: {float(loss)} vs {float(loss_ref)}")


if __name__ == "__main__":
    START, STOP = 0, 1
    # case 1: tiny tag set (T <= 16) -> VPU log-sum-exp path, single L chunk
    run_case(seed=0, B=2, L=8, SH=32, TH=32, T=12,
             start_tag=START, stop_tag=STOP, lc=128, loss_tol=2e-3)
    # case 2: larger tag set (T > 16) -> MXU log-sum-exp path, multi/partial L chunks
    run_case(seed=1, B=5, L=10, SH=48, TH=40, T=40,
             start_tag=START, stop_tag=STOP, lc=4, loss_tol=5e-3)
    print("KERNEL_OK")
</pallas_src>

<mosaic_0001>
module attributes {stable_mosaic.version = 11 : i64} {
  func.func @feat_kernel(%arg0: i32, %arg1: memref<16x32xf32, #tpu.memory_space<vmem>>, %arg2: memref<32x32xbf16, #tpu.memory_space<vmem>>, %arg3: memref<1x32xf32, #tpu.memory_space<vmem>>, %arg4: memref<32x12xbf16, #tpu.memory_space<vmem>>, %arg5: memref<16x12xbf16, #tpu.memory_space<vmem>>) attributes {dimension_semantics = [#tpu.dimension_semantics<parallel>], iteration_bounds = array<i64: 1>, scalar_prefetch = 0 : i64, scratch_operands = 0 : i64, tpu.core_type = #tpu.core_type<tc>, window_params = [{transform_indices = @transform_0, window_bounds = array<i64: 16, 32>}, {pipeline_mode = #tpu.pipeline_mode<synchronous>, transform_indices = @transform_1, window_bounds = array<i64: 32, 32>}, {pipeline_mode = #tpu.pipeline_mode<synchronous>, transform_indices = @transform_2, window_bounds = array<i64: 1, 32>}, {pipeline_mode = #tpu.pipeline_mode<synchronous>, transform_indices = @transform_3, window_bounds = array<i64: 32, 12>}, {transform_indices = @transform_4, window_bounds = array<i64: 16, 12>}]} {
    %c0 = arith.constant 0 : index
    %c0_0 = arith.constant 0 : index
    %0 = vector.load %arg1[%c0, %c0_0] : memref<16x32xf32, #tpu.memory_space<vmem>>, vector<16x32xf32>
    %1 = arith.truncf %0 : vector<16x32xf32> to vector<16x32xbf16>
    %c0_1 = arith.constant 0 : index
    %c0_2 = arith.constant 0 : index
    %2 = vector.load %arg2[%c0_1, %c0_2] : memref<32x32xbf16, #tpu.memory_space<vmem>>, vector<32x32xbf16>
    %cst = arith.constant dense<0.000000e+00> : vector<16x32xf32>
    %3 = tpu.matmul %1, %2, %cst {dimension_numbers = #tpu.dot_dimension_numbers<[1], [0], [0], [1], [0, 0, 1, 1], [], []>} : vector<16x32xbf16>, vector<32x32xbf16>, vector<16x32xf32> -> vector<16x32xf32>
    %c0_3 = arith.constant 0 : index
    %c0_4 = arith.constant 0 : index
    %4 = vector.load %arg3[%c0_3, %c0_4] : memref<1x32xf32, #tpu.memory_space<vmem>>, vector<1x32xf32>
    %5 = vector.broadcast %4 : vector<1x32xf32> to vector<16x32xf32>
    %6 = arith.addf %3, %5 : vector<16x32xf32>
    %7 = math.tanh %6 : vector<16x32xf32>
    %8 = arith.truncf %7 : vector<16x32xf32> to vector<16x32xbf16>
    %c0_5 = arith.constant 0 : index
    %c0_6 = arith.constant 0 : index
    %9 = vector.load %arg4[%c0_5, %c0_6] : memref<32x12xbf16, #tpu.memory_space<vmem>>, vector<32x12xbf16>
    %cst_7 = arith.constant dense<0.000000e+00> : vector<16x12xf32>
    %10 = tpu.matmul %8, %9, %cst_7 {dimension_numbers = #tpu.dot_dimension_numbers<[1], [0], [0], [1], [0, 0, 1, 1], [], []>} : vector<16x32xbf16>, vector<32x12xbf16>, vector<16x12xf32> -> vector<16x12xf32>
    %11 = arith.truncf %10 : vector<16x12xf32> to vector<16x12xbf16>
    %c0_8 = arith.constant 0 : index
    %c0_9 = arith.constant 0 : index
    %12 = vector.load %arg5[%c0_8, %c0_9] : memref<16x12xbf16, #tpu.memory_space<vmem>>, vector<16x12xbf16>
    tpu.vector_store %arg5[%c0_8, %c0_9], %11 {strides = array<i32>} : memref<16x12xbf16, #tpu.memory_space<vmem>>, vector<16x12xbf16>,
    return
  }
  func.func @transform_0(%arg0: i32) -> (i32, i32) {
    %c0_i32 = arith.constant 0 : i32
    %c0_i32_0 = arith.constant 0 : i32
    return %arg0, %c0_i32 : i32, i32
  }
  func.func @transform_1(%arg0: i32) -> (i32, i32) {
    %c0_i32 = arith.constant 0 : i32
    %c0_i32_0 = arith.constant 0 : i32
    %c0_i32_1 = arith.constant 0 : i32
    return %c0_i32, %c0_i32_0 : i32, i32
  }
  func.func @transform_2(%arg0: i32) -> (i32, i32) {
    %c0_i32 = arith.constant 0 : i32
    %c0_i32_0 = arith.constant 0 : i32
    %c0_i32_1 = arith.constant 0 : i32
    return %c0_i32, %c0_i32_0 : i32, i32
  }
  func.func @transform_3(%arg0: i32) -> (i32, i32) {
    %c0_i32 = arith.constant 0 : i32
    %c0_i32_0 = arith.constant 0 : i32
    %c0_i32_1 = arith.constant 0 : i32
    return %c0_i32, %c0_i32_0 : i32, i32
  }
  func.func @transform_4(%arg0: i32) -> (i32, i32) {
    %c0_i32 = arith.constant 0 : i32
    %c0_i32_0 = arith.constant 0 : i32
    return %arg0, %c0_i32 : i32, i32
  }
}

</mosaic_0001>

<bundles_post_ra>
// kernel: tpu_custom_call.1
= control target key start
LH: loop header
LB: loop body
LE: loop exit
PB: predicated region body
PF: predicated region fallthrough
CT: control target
= control target key end

     0   :  { %9 = vsyncpa [#allocation3], 0  ;;  %s346_s0 = inlined_call_operand.vmem [shape: f32[16,32], index: 0, kind: input, shape index: {}]   ;;  %s347_s1 = inlined_call_operand.hbm [shape: bf16[32,32], index: 1, kind: input, shape index: {}]   ;;  %s348_s2 = inlined_call_operand.vmem [shape: f32[1,32], index: 2, kind: input, shape index: {}]   ;;  %s349_s3 = inlined_call_operand.vmem [shape: bf16[32,12], index: 3, kind: input, shape index: {}]   ;;  %s350_s4 = inlined_call_operand.hbm [shape: bf16[16,12], index: 4, kind: output, shape index: {}]  }
   0x1   :  { %10 = vsyncpa [#allocation4], 0  ;;  %s286_s15 = smov [#allocation2]  }
   0x2   :  { %s18_s16 = sshll.u32 %s286_s15, 4  ;;  %s19_s16 = int_to_ptr.vmem [resolvable:$true] %s18_s16 }
   0x3   :  { %s250_s17 = scalar_lea.vmem %s19_s16, 256  ;;  %p255_p1 = scmp.lt.s32.totalorder %s19_s16, %s19_s16 }
   0x4   :  { %p251_p0 = scmp.ne.s32.totalorder %s19_s16, %s250_s17  ;;  %p256_p2 = scmp.lt.s32.totalorder %s250_s17, %s250_s17 }
   0x6   :  { %p257_p3 = por %p256_p2, %p255_p1 }
   0x8   :  { %p258_p4 = pnand %p257_p3, %p251_p0 }
   0xa   :  { %261 = shalt.err (!%p258_p4)
}
   0xb   :  { %s287_s18 = smov 64   ;;  %s288_s19 = smov 4  }
   0xc   :  { %24 = dma.hbm_to_vmem [thread:$0]  %s347_s1, 256, %s19_s16, [#allocation3], %s287_s18, %s287_s18, %s288_s19  }
   0xd   :  { %282 = dma.done.wait [#allocation3], 256  }
   0xe   :  { %283 = vsyncadd [#allocation3], 4294967040  ;;  %v289_v0 = vmov 0.0   ;;  %vm290_vm0 = vmmov 0   ;;  %v234_v1 = vld [vmem:[#allocation2 + $0x8] sm:$0xff]   ;;  %v235_v2 = vld [vmem:[#allocation2] sm:$0xff]  }
   0xf   :  { %212 = vmatprep.subr.bf16.mxu0 %v289_v0  ;;  %216 = vmatprep.mubr.msk.bf16.mxu0 %vm290_vm0, %v289_v0  ;;  %v33_v3 = vld [vmem:[%s346_s0] sm:$0xff]  ;;  %v34_v4 = vld [vmem:[%s346_s0 + $0x8] sm:$0xff]  ;;  %vm59_vm1 = vcmask 261120   ;;  %vm175_vm2 = vcmask 93184   ;;  %s291_s0 = smov [#allocation5]  }
  0x10   :  { %220 = vmatprep.subr.bf16.mxu1 %v289_v0  ;;  %224 = vmatprep.mubr.msk.bf16.mxu1 %vm290_vm0, %v289_v0  ;;  %v35_v5 = vpack.c.bf16 %v34_v4, %v33_v3  ;;  %v236_v6 = vld [vmem:[%s349_s3 + $0x8] sm:$0xff]   ;;  %v237_v7 = vld [vmem:[%s349_s3] sm:$0xff]   ;;  %s183_s3 = sshll.u32 %s291_s0, 4  ;;  %s184_s3 = int_to_ptr.vmem [resolvable:$true] %s183_s3 }
  0x11   :  { %213 = vmatpush3.bf16.msra.mxu0 %v234_v1  ;;  %221 = vmatpush3.bf16.msra.mxu1 %v236_v6  ;;  %v195_v8 = vld [vmem:[%s348_s2] ss:$0 sm:$0xff]  ;;  %s262_s2 = scalar_lea.vmem %s184_s3, 128  ;;  %p267_p6 = scmp.lt.s32.totalorder %s184_s3, %s184_s3 }
  0x12   :  { %214 = vmatprep.subr.bf16.mxu0 %v289_v0  ;;  %222 = vmatprep.subr.bf16.mxu1 %v289_v0  ;;  %p263_p5 = scmp.ne.s32.totalorder %s184_s3, %s262_s2  ;;  %p268_p7 = scmp.lt.s32.totalorder %s262_s2, %s262_s2 }
  0x14   :  { %p269_p8 = por %p268_p7, %p267_p6 }
  0x15   :  { %215 = vmatpush3.bf16.msra.mxu0 %v235_v2  ;;  %223 = vmatpush3.bf16.msra.mxu1 %v237_v7 }
  0x16   :  { %p270_p9 = pnand %p269_p8, %p263_p5 }
  0x18   :  { %217 = vmatmul.mubr.msk.bf16.vlgmr.msra.gmra.mxu0 %vm59_vm1, %v35_v5 }
  0xd8   :  { %v97_v9 = vpop.f32.mrf.mxu0 }
  0xd9   :  { %v98_v10 = vadd.f32 %v195_v8, %v97_v9 }
  0xda   :  { %v218_v11 = vpop.f32.mrf.mxu0 }
  0xdb   :  { %238 = vtanh.f32 %v98_v10 }
  0xdc   :  { %v100_v12 = vpop.f32.mrf.mxu0 }
  0xdd   :  { %v101_v13 = vadd.f32 %v195_v8, %v100_v12 }
  0xde   :  { %v219_v14 = vpop.f32.mrf.mxu0 }
  0xdf   :  { %240 = vtanh.f32 %v101_v13 }
  0xe8   :  { %v239_v15 = vpop.eup %238 }
  0xec   :  { %v241_v16 = vpop.eup %240 }
  0xed   :  { %v106_v17 = vpack.c.bf16 %v241_v16, %v239_v15 }
  0xef   :  { %225 = vmatmul.mubr.msk.bf16.vlgmr.msra.gmra.mxu1 %vm59_vm1, %v106_v17 }
 0x1af   :  { %v160_v18 = vpop.f32.mrf.mxu1 }
 0x1b0   :  { %v204_v19 = vpack.c.bf16 %v160_v18, %v160_v18 }
 0x1b1   :  { %v226_v20 = vpop.f32.mrf.mxu1 }
 0x1b2   :  { %176 = vst.msk [vmem:[#allocation5] sm:$0xf] %vm175_vm2, %v204_v19 }
 0x1b3   :  { %v163_v21 = vpop.f32.mrf.mxu1 }
 0x1b4   :  { %v205_v22 = vpack.c.bf16 %v163_v21, %v163_v21 }
 0x1b5   :  { %v227_v23 = vpop.f32.mrf.mxu1 }
 0x1b6   :  { %177 = vst.msk [vmem:[#allocation5 + $0x4] sm:$0xf] %vm175_vm2, %v205_v22 }
 0x1b7   :  { %273 = shalt.err (!%p270_p9)
}
 0x1b8   :  { %189 = dma.vmem_to_hbm [thread:$0]  %s184_s3, 128, %s350_s4, [#allocation4], %s287_s18, %s287_s18, %s288_s19  }
 0x1b9   :  { %284 = dma.done.wait [#allocation4], 128  }
 0x1ba   :  { %285 = vsyncadd [#allocation4], 4294967168 }
 0x1bb   :  { %193 = vsyncpa [#allocation3], 1 }
 0x1bc   :  { %194 = vsyncpa [#allocation4], 1 }

</bundles_post_ra>
